<compile_context>
chip_gen: v7x
topology: tpu7x:2x2x1
jax: 0.10.0
libtpu: 0.0.40
codegen_flags: <defaults>
</compile_context>

<pallas_src>
import functools

import jax
import jax.numpy as jnp
from jax.experimental import pallas as pl
from jax.experimental.pallas import tpu as pltpu

F32 = jnp.float32
BF16 = jnp.bfloat16


# ---------------------------------------------------------------------------
# Kernel 1: fused dual 1x1 transform
#   out[b, n] = pix_rows[b] @ xw + g_rows[b, n] @ gw + (xb + gb)
# ---------------------------------------------------------------------------
def _dual_1x1_kernel(x_ref, g_ref, xw_ref, gw_ref, b_ref, o_ref):
    x = x_ref[0].astype(BF16)                      # (thw, Cp)
    g = g_ref[0, 0].astype(BF16)                   # (thw, Cv)
    o_ref[0, 0] = (jnp.dot(x, xw_ref[...], preferred_element_type=F32)
                   + jnp.dot(g, gw_ref[...], preferred_element_type=F32)
                   + b_ref[...])


def _pick_row_tile(rows, bytes_per_row, budget=8 * 1024 * 1024):
    # Largest row tile (multiple of 8, divisor of rows) fitting a conservative
    # VMEM budget (safe for v7x's 64 MiB VMEM); fall back to the full extent.
    cap = budget // max(bytes_per_row, 1)
    if rows <= cap:
        return rows
    t = (cap // 8) * 8
    while t >= 8:
        if rows % t == 0:
            return t
        t -= 8
    return rows


def pallas_dual_1x1(x_rows, g_rows, xw, gw, bias0):
    b, hw, cp = x_rows.shape
    _, n, _, cv = g_rows.shape
    e = xw.shape[1]
    thw = _pick_row_tile(hw, 4 * 2 * (cp + cv + 2 * e))
    grid = (b, n, hw // thw)
    return pl.pallas_call(
        _dual_1x1_kernel,
        out_shape=jax.ShapeDtypeStruct((b, n, hw, e), F32),
        grid=grid,
        in_specs=[
            pl.BlockSpec((1, thw, cp), lambda i, j, k: (i, k, 0)),      # shared over n
            pl.BlockSpec((1, 1, thw, cv), lambda i, j, k: (i, j, k, 0)),
            pl.BlockSpec((cp, e), lambda i, j, k: (0, 0)),
            pl.BlockSpec((cv, e), lambda i, j, k: (0, 0)),
            pl.BlockSpec((1, e), lambda i, j, k: (0, 0)),
        ],
        out_specs=pl.BlockSpec((1, 1, thw, e), lambda i, j, k: (i, j, k, 0)),
        compiler_params=pltpu.CompilerParams(
            dimension_semantics=("parallel", "parallel", "parallel")),
    )(x_rows, g_rows, xw, gw, bias0)


# ---------------------------------------------------------------------------
# Kernel 2: fused GroupResBlock     out = conv2(relu(conv1(relu(g)))) + g
# One (hw, E) slab per grid step.  The zero-padded activation lives in a VMEM
# scratch as flattened image rows; each 3x3 tap is a shifted row-slice feeding
# an (hw,E)x(E,E) MXU matmul, with column masks fixing the row wrap at the
# left/right image borders.  No HBM im2col.
# ---------------------------------------------------------------------------
def _resblock_kernel(w_img, g_ref, col_ref, w1_ref, b1_ref, w2_ref, b2_ref,
                     o_ref, pad_ref):
    hw, e = g_ref.shape[1], g_ref.shape[2]
    pad0 = w_img + 8
    g = g_ref[0]                                   # (hw, e) f32
    col = col_ref[...]                             # (hw, 1) int32 = pixel column
    not_first = col != 0
    not_last = col != (w_img - 1)

    def conv3x3(wk_ref, bk_ref):
        acc = jnp.zeros((hw, e), F32)
        for di in range(3):
            for dj in range(3):
                off = pad0 + (di - 1) * w_img + (dj - 1)
                p = pad_ref[pl.ds(off, hw), :]
                if dj == 0:
                    p = jnp.where(not_first, p, jnp.zeros_like(p))
                elif dj == 2:
                    p = jnp.where(not_last, p, jnp.zeros_like(p))
                acc = acc + jnp.dot(p.astype(BF16), wk_ref[di, dj],
                                    preferred_element_type=F32)
        return acc + bk_ref[...]

    pad_ref[...] = jnp.zeros_like(pad_ref)
    pad_ref[pl.ds(pad0, hw), :] = jnp.maximum(g, 0.0)
    o1 = conv3x3(w1_ref, b1_ref)
    pad_ref[pl.ds(pad0, hw), :] = jnp.maximum(o1, 0.0)
    o2 = conv3x3(w2_ref, b2_ref)
    o_ref[0] = o2 + g


def pallas_resblock(g, w_img, w1, b1, w2, b2):
    bn, hw, e = g.shape
    pad_rows = hw + 2 * (w_img + 8)
    col = (jnp.arange(hw, dtype=jnp.int32) % w_img).reshape(hw, 1)
    return pl.pallas_call(
        functools.partial(_resblock_kernel, w_img),
        out_shape=jax.ShapeDtypeStruct((bn, hw, e), F32),
        grid=(bn,),
        in_specs=[
            pl.BlockSpec((1, hw, e), lambda i: (i, 0, 0)),
            pl.BlockSpec((hw, 1), lambda i: (0, 0)),
            pl.BlockSpec((3, 3, e, e), lambda i: (0, 0, 0, 0)),
            pl.BlockSpec((1, e), lambda i: (0, 0)),
            pl.BlockSpec((3, 3, e, e), lambda i: (0, 0, 0, 0)),
            pl.BlockSpec((1, e), lambda i: (0, 0)),
        ],
        out_specs=pl.BlockSpec((1, hw, e), lambda i: (i, 0, 0)),
        scratch_shapes=[pltpu.VMEM((pad_rows, e), F32)],
        compiler_params=pltpu.CompilerParams(dimension_semantics=("parallel",)),
    )(g, col, w1, b1, w2, b2)


# ---------------------------------------------------------------------------
# Kernel 3: fused CBAM + residual add     out = g1 + SpatialGate(ChannelGate(g1))
# Channel gate: spatial avg/max pool -> shared MLP -> sigmoid -> scale.
# Spatial gate: ChannelPool ([max, mean] over channels) -> 7x7 conv (eval-BN
# folded into the weights) -> sigmoid -> scale.  The 98-tap 7x7 conv runs on the
# VPU from a zero-padded VMEM scratch with scalar weights in SMEM; no attention
# map, comp map or gate ever hits HBM.
# ---------------------------------------------------------------------------
def _cbam_kernel(w_img, x_ref, col_ref, w1_ref, b1_ref, w2_ref, b2_ref, sp_ref,
                 o_ref, pad_ref):
    hw, e = x_ref.shape[1], x_ref.shape[2]
    pad0 = 3 * w_img + 8
    x = x_ref[0]                                   # (hw, e) f32
    col = col_ref[...]                             # (hw, 1) int32

    # --- channel gate ---
    avg = jnp.mean(x, axis=0, keepdims=True)       # (1, e)
    mx = jnp.max(x, axis=0, keepdims=True)

    def mlp(v):
        h1 = jnp.maximum(
            jnp.dot(v.astype(BF16), w1_ref[...], preferred_element_type=F32)
            + b1_ref[...], 0.0)
        return (jnp.dot(h1.astype(BF16), w2_ref[...], preferred_element_type=F32)
                + b2_ref[...])

    att = jax.nn.sigmoid(mlp(avg) + mlp(mx))       # (1, e)
    y = x * att                                    # (hw, e)

    # --- spatial gate: 7x7 conv over the [max, mean] channel-pool map ---
    cmax = jnp.max(y, axis=1, keepdims=True)       # (hw, 1)
    cmean = jnp.mean(y, axis=1, keepdims=True)     # (hw, 1)
    pad_ref[...] = jnp.zeros_like(pad_ref)
    pad_ref[pl.ds(pad0, hw), :] = jnp.concatenate([cmax, cmean], axis=1)

    gate = jnp.zeros((hw, 1), F32)
    for di in range(7):
        for dj in range(7):
            off = pad0 + (di - 3) * w_img + (dj - 3)
            p = pad_ref[pl.ds(off, hw), :]         # (hw, 2)
            if dj < 3:
                p = jnp.where(col >= (3 - dj), p, jnp.zeros_like(p))
            elif dj > 3:
                p = jnp.where(col < w_img - (dj - 3), p, jnp.zeros_like(p))
            t = 2 * (di * 7 + dj)
            gate = gate + p[:, 0:1] * sp_ref[t] + p[:, 1:2] * sp_ref[t + 1]

    o_ref[0] = x + y * jax.nn.sigmoid(gate)        # g1 + CBAM(g1)


def pallas_cbam(g1, w_img, l1w, l1b, l2w, l2b, sp_flat):
    bn, hw, e = g1.shape
    hd = l1w.shape[1]
    pad_rows = hw + 2 * (3 * w_img + 8)
    col = (jnp.arange(hw, dtype=jnp.int32) % w_img).reshape(hw, 1)
    return pl.pallas_call(
        functools.partial(_cbam_kernel, w_img),
        out_shape=jax.ShapeDtypeStruct((bn, hw, e), F32),
        grid=(bn,),
        in_specs=[
            pl.BlockSpec((1, hw, e), lambda i: (i, 0, 0)),
            pl.BlockSpec((hw, 1), lambda i: (0, 0)),
            pl.BlockSpec((e, hd), lambda i: (0, 0)),
            pl.BlockSpec((1, hd), lambda i: (0, 0)),
            pl.BlockSpec((hd, e), lambda i: (0, 0)),
            pl.BlockSpec((1, e), lambda i: (0, 0)),
            pl.BlockSpec(memory_space=pltpu.MemorySpace.SMEM),   # 98 scalar taps
        ],
        out_specs=pl.BlockSpec((1, hw, e), lambda i: (i, 0, 0)),
        scratch_shapes=[pltpu.VMEM((pad_rows, 2), F32)],
        compiler_params=pltpu.CompilerParams(dimension_semantics=("parallel",)),
    )(g1, col, l1w, l1b, l2w, l2b, sp_flat)


# ---------------------------------------------------------------------------
# Fuser forward (GroupFeatureFusionBlock) on top of the three kernels
# ---------------------------------------------------------------------------
def _fuser_pallas(params, pix_feat, g_feat):
    b, n, cf, h, w = g_feat.shape
    cp = pix_feat.shape[1]
    e = params["l2_b"].shape[1]
    hw, bn = h * w, b * n

    x_rows = jnp.transpose(pix_feat, (0, 2, 3, 1)).reshape(b, hw, cp)
    g_rows = jnp.transpose(g_feat, (0, 1, 3, 4, 2)).reshape(b, n, hw, cf)

    g0 = pallas_dual_1x1(x_rows, g_rows, params["xw"], params["gw"],
                         params["bias0"]).reshape(bn, hw, e)
    g1 = pallas_resblock(g0, w, params["b1c1_w"], params["b1c1_b"],
                         params["b1c2_w"], params["b1c2_b"])
    gsum = pallas_cbam(g1, w, params["l1_w"], params["l1_b"],
                       params["l2_w"], params["l2_b"], params["sp_w"])
    g2 = pallas_resblock(gsum, w, params["b2c1_w"], params["b2c1_b"],
                         params["b2c2_w"], params["b2c2_b"])
    return jnp.transpose(g2.reshape(b, n, h, w, e), (0, 1, 4, 2, 3))


def mask_encoder_fuser_forward(params, pix_feat, g_feat, *, chunk_size=-1):
    # TODO(synk): the pretrained ResNet trunk (conv1/bn1/maxpool/layer1-3 applied
    # to stack([masks, others]) distributed with the image) is not reimplemented;
    # `g_feat` stands in for its per-object output features.
    num_objects = g_feat.shape[1]
    if chunk_size < 1:
        chunk_size = num_objects
    outs = []
    for i in range(0, num_objects, chunk_size):
        outs.append(_fuser_pallas(params, pix_feat, g_feat[:, i:i + chunk_size]))
    return jnp.concatenate(outs, axis=1)


# ---------------------------------------------------------------------------
# Plain-jnp reference (same bf16-input / f32-accumulate matmul policy)
# ---------------------------------------------------------------------------
def _im2col(x, k, pad):
    # x: (B, H, W, C) -> (B, H, W, k*k*C); patch order (di, dj) outer, C inner.
    b, h, w, c = x.shape
    xp = jnp.pad(x, ((0, 0), (pad, pad), (pad, pad), (0, 0)))
    cols = [xp[:, di:di + h, dj:dj + w, :] for di in range(k) for dj in range(k)]
    return jnp.concatenate(cols, axis=-1)


def _reference_forward(params, pix_feat, g_feat):
    b, n, cf, h, w = g_feat.shape
    cp = pix_feat.shape[1]
    e = params["l2_b"].shape[1]
    hw, bn = h * w, b * n

    x_rows = jnp.transpose(pix_feat, (0, 2, 3, 1)).reshape(b, hw, cp)
    g_rows = jnp.transpose(g_feat, (0, 1, 3, 4, 2)).reshape(b, n, hw, cf)
    x_t = jnp.dot(x_rows.astype(BF16), params["xw"], preferred_element_type=F32)
    g_t = jnp.dot(g_rows.astype(BF16), params["gw"], preferred_element_type=F32)
    g0 = (x_t[:, None] + g_t + params["bias0"]).reshape(bn, hw, e)

    def res_block(gr, wk1, bk1, wk2, bk2):
        a1 = jnp.maximum(gr, 0.0).astype(BF16).reshape(bn, h, w, e)
        p1 = _im2col(a1, 3, 1).reshape(bn * hw, 9 * e)
        o1 = jnp.dot(p1, wk1.reshape(9 * e, e), preferred_element_type=F32) + bk1
        a2 = jnp.maximum(o1, 0.0).astype(BF16).reshape(bn, h, w, e)
        p2 = _im2col(a2, 3, 1).reshape(bn * hw, 9 * e)
        o2 = jnp.dot(p2, wk2.reshape(9 * e, e), preferred_element_type=F32) + bk2
        return o2.reshape(bn, hw, e) + gr

    g1 = res_block(g0, params["b1c1_w"], params["b1c1_b"],
                   params["b1c2_w"], params["b1c2_b"])

    avg = jnp.mean(g1, axis=1, keepdims=True)
    mx = jnp.max(g1, axis=1, keepdims=True)

    def mlp(v):
        h1 = jnp.maximum(
            jnp.dot(v.astype(BF16), params["l1_w"], preferred_element_type=F32)
            + params["l1_b"], 0.0)
        return (jnp.dot(h1.astype(BF16), params["l2_w"], preferred_element_type=F32)
                + params["l2_b"])

    att = jax.nn.sigmoid(mlp(avg) + mlp(mx))
    y = g1 * att
    comp = jnp.concatenate([jnp.max(y, axis=2, keepdims=True),
                            jnp.mean(y, axis=2, keepdims=True)], axis=2)
    cols = _im2col(comp.reshape(bn, h, w, 2), 7, 3).reshape(bn * hw, 98)
    gate = jnp.dot(cols, params["sp_w"].reshape(98, 1),
                   precision=jax.lax.Precision.HIGHEST).reshape(bn, hw, 1)
    gsum = g1 + y * jax.nn.sigmoid(gate)

    g2 = res_block(gsum, params["b2c1_w"], params["b2c1_b"],
                   params["b2c2_w"], params["b2c2_b"])
    return jnp.transpose(g2.reshape(b, n, h, w, e), (0, 1, 4, 2, 3))


# ---------------------------------------------------------------------------
# Deterministic parameter init (shapes follow the PyTorch fuser)
# ---------------------------------------------------------------------------
def init_params(key, pixel_dim, final_dim, value_dim, reduction=16):
    e = value_dim
    hd = max(e // reduction, 1)
    ks = jax.random.split(key, 20)

    def rnd(k, shape, scale=0.1):
        return scale * jax.random.normal(k, shape, F32)

    xw = rnd(ks[0], (e, pixel_dim, 1, 1)); xb = rnd(ks[1], (e,), 0.05)
    gw = rnd(ks[2], (e, final_dim, 1, 1)); gb = rnd(ks[3], (e,), 0.05)
    b1c1 = rnd(ks[4], (e, e, 3, 3)); b1c1b = rnd(ks[5], (e,), 0.05)
    b1c2 = rnd(ks[6], (e, e, 3, 3)); b1c2b = rnd(ks[7], (e,), 0.05)
    l1 = rnd(ks[8], (hd, e)); l1b = rnd(ks[9], (hd,), 0.05)      # Linear(E, E//16)
    l2 = rnd(ks[10], (e, hd)); l2b = rnd(ks[11], (e,), 0.05)     # Linear(E//16, E)
    sp = rnd(ks[12], (1, 2, 7, 7))                               # SpatialGate conv (bias=False)
    b2c1 = rnd(ks[13], (e, e, 3, 3)); b2c1b = rnd(ks[14], (e,), 0.05)
    b2c2 = rnd(ks[15], (e, e, 3, 3)); b2c2b = rnd(ks[16], (e,), 0.05)

    # SpatialGate BatchNorm2d(1): eval mode with default running stats
    # (mean=0, var=1, gamma=1, beta=0) folded into the 7x7 conv weights.
    # TODO(synk): training-mode (batch-statistics) BatchNorm is not implemented.
    bn_scale = 1.0 / jnp.sqrt(1.0 + 1e-5)

    def hwio3x3(wc):                 # (Cout, Cin, 3, 3) -> (3, 3, Cin, Cout) bf16
        return jnp.transpose(wc, (2, 3, 1, 0)).astype(BF16)

    return dict(
        xw=jnp.transpose(xw[:, :, 0, 0], (1, 0)).astype(BF16),   # (Cp, E)
        gw=jnp.transpose(gw[:, :, 0, 0], (1, 0)).astype(BF16),   # (Cf, E)
        bias0=(xb + gb).reshape(1, e),
        b1c1_w=hwio3x3(b1c1), b1c1_b=b1c1b.reshape(1, e),
        b1c2_w=hwio3x3(b1c2), b1c2_b=b1c2b.reshape(1, e),
        l1_w=jnp.transpose(l1).astype(BF16), l1_b=l1b.reshape(1, hd),
        l2_w=jnp.transpose(l2).astype(BF16), l2_b=l2b.reshape(1, e),
        sp_w=jnp.transpose(sp, (2, 3, 1, 0)).reshape(98) * bn_scale,   # (7*7*2,) f32
        b2c1_w=hwio3x3(b2c1), b2c1_b=b2c1b.reshape(1, e),
        b2c2_w=hwio3x3(b2c2), b2c2_b=b2c2b.reshape(1, e),
    )


# ---------------------------------------------------------------------------
if __name__ == "__main__":
    B, N_OBJ, H, W = 2, 2, 16, 16
    PIXEL_DIM, FINAL_DIM, VALUE_DIM = 8, 8, 32

    key = jax.random.PRNGKey(0)
    kp, kx, kg = jax.random.split(key, 3)
    params = init_params(kp, PIXEL_DIM, FINAL_DIM, VALUE_DIM)

    pix_feat = jax.random.normal(kx, (B, PIXEL_DIM, H, W), F32)
    g_feat = jax.random.normal(kg, (B, N_OBJ, FINAL_DIM, H, W), F32)

    out = mask_encoder_fuser_forward(params, pix_feat, g_feat)
    out = jax.block_until_ready(out)
    assert out.shape == (B, N_OBJ, VALUE_DIM, H, W), out.shape

    ref = _reference_forward(params, pix_feat, g_feat)
    max_err = float(jnp.max(jnp.abs(out - ref)))
    assert jnp.allclose(out, ref, atol=1e-2, rtol=1e-2), f"max abs err {max_err}"

    print("KERNEL_OK")
</pallas_src>

<mosaic_0001>
module attributes {stable_mosaic.version = 11 : i64} {
  func.func @_dual_1x1_kernel(%arg0: i32, %arg1: i32, %arg2: i32, %arg3: memref<1x256x8xf32, #tpu.memory_space<vmem>>, %arg4: memref<1x1x256x8xf32, #tpu.memory_space<vmem>>, %arg5: memref<8x32xbf16, #tpu.memory_space<vmem>>, %arg6: memref<8x32xbf16, #tpu.memory_space<vmem>>, %arg7: memref<1x32xf32, #tpu.memory_space<vmem>>, %arg8: memref<1x1x256x32xf32, #tpu.memory_space<vmem>>) attributes {dimension_semantics = [#tpu.dimension_semantics<parallel>, #tpu.dimension_semantics<parallel>, #tpu.dimension_semantics<parallel>], iteration_bounds = array<i64: 2, 2, 1>, scalar_prefetch = 0 : i64, scratch_operands = 0 : i64, tpu.core_type = #tpu.core_type<tc>, window_params = [{transform_indices = @transform_0, window_bounds = array<i64: 1, 256, 8>}, {transform_indices = @transform_1, window_bounds = array<i64: 1, 1, 256, 8>}, {pipeline_mode = #tpu.pipeline_mode<synchronous>, transform_indices = @transform_2, window_bounds = array<i64: 8, 32>}, {pipeline_mode = #tpu.pipeline_mode<synchronous>, transform_indices = @transform_3, window_bounds = array<i64: 8, 32>}, {pipeline_mode = #tpu.pipeline_mode<synchronous>, transform_indices = @transform_4, window_bounds = array<i64: 1, 32>}, {transform_indices = @transform_5, window_bounds = array<i64: 1, 1, 256, 32>}]} {
    %c0 = arith.constant 0 : index
    %c0_0 = arith.constant 0 : index
    %c0_1 = arith.constant 0 : index
    %0 = vector.load %arg3[%c0, %c0_0, %c0_1] : memref<1x256x8xf32, #tpu.memory_space<vmem>>, vector<1x256x8xf32>
    %1 = vector.shape_cast %0 : vector<1x256x8xf32> to vector<256x8xf32>
    %2 = arith.truncf %1 : vector<256x8xf32> to vector<256x8xbf16>
    %c0_2 = arith.constant 0 : index
    %c0_3 = arith.constant 0 : index
    %c0_4 = arith.constant 0 : index
    %c0_5 = arith.constant 0 : index
    %3 = vector.load %arg4[%c0_2, %c0_3, %c0_4, %c0_5] : memref<1x1x256x8xf32, #tpu.memory_space<vmem>>, vector<1x1x256x8xf32>
    %4 = vector.shape_cast %3 : vector<1x1x256x8xf32> to vector<256x8xf32>
    %5 = arith.truncf %4 : vector<256x8xf32> to vector<256x8xbf16>
    %c0_6 = arith.constant 0 : index
    %c0_7 = arith.constant 0 : index
    %6 = vector.load %arg5[%c0_6, %c0_7] : memref<8x32xbf16, #tpu.memory_space<vmem>>, vector<8x32xbf16>
    %cst = arith.constant dense<0.000000e+00> : vector<256x32xf32>
    %7 = tpu.matmul %2, %6, %cst {dimension_numbers = #tpu.dot_dimension_numbers<[1], [0], [0], [1], [0, 0, 1, 1], [], []>} : vector<256x8xbf16>, vector<8x32xbf16>, vector<256x32xf32> -> vector<256x32xf32>
    %c0_8 = arith.constant 0 : index
    %c0_9 = arith.constant 0 : index
    %8 = vector.load %arg6[%c0_8, %c0_9] : memref<8x32xbf16, #tpu.memory_space<vmem>>, vector<8x32xbf16>
    %cst_10 = arith.constant dense<0.000000e+00> : vector<256x32xf32>
    %9 = tpu.matmul %5, %8, %cst_10 {dimension_numbers = #tpu.dot_dimension_numbers<[1], [0], [0], [1], [0, 0, 1, 1], [], []>} : vector<256x8xbf16>, vector<8x32xbf16>, vector<256x32xf32> -> vector<256x32xf32>
    %10 = arith.addf %7, %9 : vector<256x32xf32>
    %c0_11 = arith.constant 0 : index
    %c0_12 = arith.constant 0 : index
    %11 = vector.load %arg7[%c0_11, %c0_12] : memref<1x32xf32, #tpu.memory_space<vmem>>, vector<1x32xf32>
    %12 = vector.broadcast %11 : vector<1x32xf32> to vector<256x32xf32>
    %13 = arith.addf %10, %12 : vector<256x32xf32>
    %c0_13 = arith.constant 0 : index
    %c0_14 = arith.constant 0 : index
    %c0_15 = arith.constant 0 : index
    %c0_16 = arith.constant 0 : index
    %14 = vector.load %arg8[%c0_13, %c0_14, %c0_15, %c0_16] : memref<1x1x256x32xf32, #tpu.memory_space<vmem>>, vector<1x1x256x32xf32>
    %15 = vector.shape_cast %14 : vector<1x1x256x32xf32> to vector<256x32xf32>
    %16 = vector.shape_cast %13 : vector<256x32xf32> to vector<1x1x256x32xf32>
    tpu.vector_store %arg8[%c0_13, %c0_14, %c0_15, %c0_16], %16 {strides = array<i32>} : memref<1x1x256x32xf32, #tpu.memory_space<vmem>>, vector<1x1x256x32xf32>,
    return
  }
  func.func @transform_0(%arg0: i32, %arg1: i32, %arg2: i32) -> (i32, i32, i32) {
    %c0_i32 = arith.constant 0 : i32
    %c0_i32_0 = arith.constant 0 : i32
    return %arg0, %arg2, %c0_i32 : i32, i32, i32
  }
  func.func @transform_1(%arg0: i32, %arg1: i32, %arg2: i32) -> (i32, i32, i32, i32) {
    %c0_i32 = arith.constant 0 : i32
    %c0_i32_0 = arith.constant 0 : i32
    return %arg0, %arg1, %arg2, %c0_i32 : i32, i32, i32, i32
  }
  func.func @transform_2(%arg0: i32, %arg1: i32, %arg2: i32) -> (i32, i32) {
    %c0_i32 = arith.constant 0 : i32
    %c0_i32_0 = arith.constant 0 : i32
    %c0_i32_1 = arith.constant 0 : i32
    return %c0_i32, %c0_i32_0 : i32, i32
  }
  func.func @transform_3(%arg0: i32, %arg1: i32, %arg2: i32) -> (i32, i32) {
    %c0_i32 = arith.constant 0 : i32
    %c0_i32_0 = arith.constant 0 : i32
    %c0_i32_1 = arith.constant 0 : i32
    return %c0_i32, %c0_i32_0 : i32, i32
  }
  func.func @transform_4(%arg0: i32, %arg1: i32, %arg2: i32) -> (i32, i32) {
    %c0_i32 = arith.constant 0 : i32
    %c0_i32_0 = arith.constant 0 : i32
    %c0_i32_1 = arith.constant 0 : i32
    return %c0_i32, %c0_i32_0 : i32, i32
  }
  func.func @transform_5(%arg0: i32, %arg1: i32, %arg2: i32) -> (i32, i32, i32, i32) {
    %c0_i32 = arith.constant 0 : i32
    %c0_i32_0 = arith.constant 0 : i32
    return %arg0, %arg1, %arg2, %c0_i32 : i32, i32, i32, i32
  }
}

</mosaic_0001>

<bundles_post_ra>
// kernel: tpu_custom_call.1
= control target key start
LH: loop header
LB: loop body
LE: loop exit
PB: predicated region body
PF: predicated region fallthrough
CT: control target
= control target key end

     0   :  { %s1356_s18 = smov 0   ;;  %s1358_s19 = smov 0   ;;  %s1626_s0 = inlined_call_operand.vmem [shape: f32[2,256,8], index: 0, kind: input, shape index: {}]   ;;  %s1627_s1 = inlined_call_operand.vmem [shape: f32[2,2,256,8], index: 1, kind: input, shape index: {}]   ;;  %s1628_s2 = inlined_call_operand.vmem [shape: bf16[8,32], index: 2, kind: input, shape index: {}]   ;;  %s1629_s3 = inlined_call_operand.vmem [shape: bf16[8,32], index: 3, kind: input, shape index: {}]   ;;  %s1630_s4 = inlined_call_operand.vmem [shape: f32[1,32], index: 4, kind: input, shape index: {}]   ;;  %s1631_s5 = inlined_call_operand.vmem [shape: f32[2,2,256,32], index: 5, kind: output, shape index: {}]  }
   0x1   :  { %s1360_s20 = smov 0   ;;  %s1362_s21 = smov 0  }
   0x2   :  { %s1364_s22 = smov 0  }
   0x3 LB: > { %s30_s23 = sadd.s32 1, %s1316_s20  ;;  %s34_s24 = sadd.s32 1, %s1320_s21  ;;  %s1324_s22 = sphi %s1364_s22, %s15_s22   ;;  %s1320_s21 = sphi %s1362_s21, %s1635_s21   ;;  %s1316_s20 = sphi %s1360_s20, %s1634_s20   ;;  %s1312_s19 = sphi %s1358_s19, %s1633_s19   ;;  %s1308_s18 = sphi %s1356_s18, %s1632_s18  }
   0x4   : > { %p32_p0 = scmp.ge.s32.totalorder %s30_s23, 2  ;;  %p1065_p1 = scmp.ge.s32.totalorder %s1324_s22, 1 }
   0x5   : > { %p240_p2 = scmp.lt.s32.totalorder %s1324_s22, 5 }
   0x6   : > { %s1637_s23 = smov (%p32_p0, %s30_s23), 0  ;;  %s1639_s24 = smov (!%p32_p0, %s34_s24), %s1320_s21 }
   0x7   : > { %p241_p3 = pnand %p1065_p1, %p240_p2  ;;  %p36_p4 = scmp.ge.s32.totalorder %s1639_s24, 2 }
   0x8   : > { %v428_v0 = vld [vmem:[%s1628_s2] sm:$0xf] (!%p241_p3)  ;;  %vm479_vm0 = vcmask (!%p241_p3), 1043456   ;;  %p294_p5 = scmp.lt.s32.totalorder (!%p241_p3), %s1312_s19, 1  ;;  %p306_p6 = scmp.lt.s32.totalorder (!%p241_p3), %s1308_s18, 1  ;;  %vm430_vm1 = vcmask (!%p241_p3), 64512  }
   0x9   : > { %s1641_s24 = smov (%p36_p4, %s1639_s24), 0  ;;  %244 = sbr.rel (%p241_p3) target bundleno = 302 (0x12e), region = 40 }
   0xa   : > { %v429_v1 = vld [vmem:[%s1629_s3] sm:$0xf] (!%p241_p3)  ;;  %1245 = vmatprep.subr.msk.bf16.mxu0 (!%p241_p3), %vm479_vm0, %v428_v0  ;;  %v693_v2 = vsel (!%p241_p3), %vm479_vm0, %v428_v0, 0  ;;  %vm895_vm2 = vcmask (!%p241_p3), 261120  }
   0xb   : > { %1244 = vmatprep.subr.msk.bf16.mxu1 (!%p241_p3), %vm479_vm0, %v429_v1  ;;  %v481_v3 = vsel (!%p241_p3), %vm479_vm0, %v429_v1, 0  ;;  %1179 = vmatpush3.bf16.msra.mxu0 (!%p241_p3), %v693_v2 }
   0xc   : > { %1145 = vmatpush3.bf16.msra.mxu1 (!%p241_p3), %v481_v3 }
  0x10   : > { %s1643_s19 = smov (!%p294_p5, %s1312_s19), 1  ;;  %s1645_s18 = smov (!%p306_p6, %s1308_s18), 1 }
  0x11   : > { %s1109_s29 = sshll.u32 %s1643_s19, 8  ;;  %s1069_s30 = sshll.u32 %s1643_s19, 6 }
  0x12   : > { %s1395_s8 = scalar_lea.vmem %s1626_s0, %s1109_s29  ;;  %s1068_s9 = sshll.u32 %s1645_s18, 5 }
  0x13   : > { %v332_v4 = vld [vmem:[%s1395_s8] sm:$0xff]  ;;  %v333_v5 = vld [vmem:[%s1395_s8 + $0x8] sm:$0xff]  ;;  %v334_v6 = vld [vmem:[%s1395_s8 + $0x10] sm:$0xff]  ;;  %s1400_s10 = sadd.s32 %s1069_s30, %s1068_s9 }
  0x14   : > { %v364_v7 = vpack.c.bf16 %v333_v5, %v332_v4  ;;  %v335_v8 = vld [vmem:[%s1395_s8 + $0x18] sm:$0xff]  ;;  %s1070_s11 = sshll.u32 %s1400_s10, 3  ;;  %v336_v9 = vld [vmem:[%s1395_s8 + $0x20] sm:$0xff]  ;;  %v337_v10 = vld [vmem:[%s1395_s8 + $0x28] sm:$0xff] }
  0x15   : > { %v365_v11 = vpack.c.bf16 %v335_v8, %v334_v6  ;;  %s1411_s14 = scalar_lea.vmem %s1627_s1, %s1070_s11  ;;  %v366_v12 = vpack.c.bf16 %v337_v10, %v336_v9  ;;  %v338_v21 = vld [vmem:[%s1395_s8 + $0x30] sm:$0xff]  ;;  %v339_v22 = vld [vmem:[%s1395_s8 + $0x38] sm:$0xff]  ;;  %v340_v24 = vld [vmem:[%s1395_s8 + $0x40] sm:$0xff]  ;;  %s1513_s19 = scalar_lea.vmem %s1631_s5, %s1070_s11 }
  0x16   : > { %1180 = vmatprep.mubr.msk.bf16.mxu0 %vm430_vm1, %v364_v7  ;;  %v380_v13 = vld [vmem:[%s1411_s14] sm:$0xff]  ;;  %v381_v14 = vld [vmem:[%s1411_s14 + $0x8] sm:$0xff]  ;;  %v382_v15 = vld [vmem:[%s1411_s14 + $0x10] sm:$0xff]  ;;  %v367_v26 = vpack.c.bf16 %v339_v22, %v338_v21 }
  0x17   : > { %1181 = vmatmul.mubr.msk.bf16.vlgmr.msra.gmra.mrb[0].mxu0 %vm430_vm1, %v365_v11  ;;  %v412_v16 = vpack.c.bf16 %v381_v14, %v380_v13  ;;  %v383_v17 = vld [vmem:[%s1411_s14 + $0x18] sm:$0xff]  ;;  %v384_v18 = vld [vmem:[%s1411_s14 + $0x20] sm:$0xff]  ;;  %v385_v19 = vld [vmem:[%s1411_s14 + $0x28] sm:$0xff] }
  0x18   : > { %v413_v20 = vpack.c.bf16 %v383_v17, %v382_v15  ;;  %1184 = vmatprep.mubr.msk.bf16.mxu0 %vm430_vm1, %v366_v12  ;;  %v414_v23 = vpack.c.bf16 %v385_v19, %v384_v18  ;;  %v341_v25 = vld [vmem:[%s1395_s8 + $0x48] sm:$0xff]  ;;  %v386_v27 = vld [vmem:[%s1411_s14 + $0x30] sm:$0xff]  ;;  %v387_v28 = vld [vmem:[%s1411_s14 + $0x38] sm:$0xff] }
  0x19   : > { %1146 = vmatprep.mubr.msk.bf16.mxu1 %vm430_vm1, %v412_v16  ;;  %v368_v29 = vpack.c.bf16 %v341_v25, %v340_v24  ;;  %v388_v30 = vld [vmem:[%s1411_s14 + $0x40] sm:$0xff]  ;;  %v389_v31 = vld [vmem:[%s1411_s14 + $0x48] sm:$0xff]  ;;  %v415_v32 = vpack.c.bf16 %v387_v28, %v386_v27  ;;  %v342_v34 = vld [vmem:[%s1395_s8 + $0x50] sm:$0xff] }
  0x1a   : > { %1147 = vmatmul.mubr.msk.bf16.vlgmr.msra.gmra.mrb[0].mxu1 %vm430_vm1, %v413_v20  ;;  %v416_v33 = vpack.c.bf16 %v389_v31, %v388_v30  ;;  %v343_v35 = vld [vmem:[%s1395_s8 + $0x58] sm:$0xff]  ;;  %v344_v36 = vld [vmem:[%s1395_s8 + $0x60] sm:$0xff]  ;;  %v345_v37 = vld [vmem:[%s1395_s8 + $0x68] sm:$0xff] }
  0x1b   : > { %1150 = vmatprep.mubr.msk.bf16.mxu1 %vm430_vm1, %v414_v23  ;;  %v369_v38 = vpack.c.bf16 %v343_v35, %v342_v34  ;;  %v390_v39 = vld [vmem:[%s1411_s14 + $0x50] sm:$0xff]  ;;  %v391_v40 = vld [vmem:[%s1411_s14 + $0x58] sm:$0xff]  ;;  %v370_v41 = vpack.c.bf16 %v345_v37, %v344_v36  ;;  %v392_v42 = vld [vmem:[%s1411_s14 + $0x60] sm:$0xff] }
  0x1c   : > { %v393_v43 = vld [vmem:[%s1411_s14 + $0x68] sm:$0xff]  ;;  %v417_v44 = vpack.c.bf16 %v391_v40, %v390_v39  ;;  %v346_v46 = vld [vmem:[%s1395_s8 + $0x70] sm:$0xff]  ;;  %v347_v47 = vld [vmem:[%s1395_s8 + $0x78] sm:$0xff] }
  0x1d   : > { %v418_v45 = vpack.c.bf16 %v393_v43, %v392_v42  ;;  %v348_v48 = vld [vmem:[%s1395_s8 + $0x80] sm:$0xff]  ;;  %v349_v49 = vld [vmem:[%s1395_s8 + $0x88] sm:$0xff]  ;;  %v371_v50 = vpack.c.bf16 %v347_v47, %v346_v46  ;;  %v394_v51 = vld [vmem:[%s1411_s14 + $0x70] sm:$0xff] }
  0x1e   : > { %v395_v52 = vld [vmem:[%s1411_s14 + $0x78] sm:$0xff]  ;;  %v372_v53 = vpack.c.bf16 %v349_v49, %v348_v48  ;;  %v396_v54 = vld [vmem:[%s1411_s14 + $0x80] sm:$0xff]  ;;  %v397_v55 = vld [vmem:[%s1411_s14 + $0x88] sm:$0xff] }
  0x1f   : > { %1185 = vmatmul.mubr.msk.bf16.gmra.mrb[4].mxu0 %vm430_vm1, %v367_v26  ;;  %v419_v56 = vpack.c.bf16 %v395_v52, %v394_v51  ;;  %v420_v57 = vpack.c.bf16 %v397_v55, %v396_v54  ;;  %v350_v58 = vld [vmem:[%s1395_s8 + $0x90] sm:$0xff]  ;;  %v351_v59 = vld [vmem:[%s1395_s8 + $0x98] sm:$0xff]  ;;  %v352_v60 = vld [vmem:[%s1395_s8 + $0xa0] sm:$0xff] }
  0x20   : > { %1188 = vmatprep.mubr.msk.bf16.mxu0 %vm430_vm1, %v368_v29  ;;  %v353_v61 = vld [vmem:[%s1395_s8 + $0xa8] sm:$0xff]  ;;  %v373_v62 = vpack.c.bf16 %v351_v59, %v350_v58  ;;  %v398_v63 = vld [vmem:[%s1411_s14 + $0x90] sm:$0xff]  ;;  %v399_v0 = vld [vmem:[%s1411_s14 + $0x98] sm:$0xff] }
  0x21   : > { %v374_v1 = vpack.c.bf16 %v353_v61, %v352_v60  ;;  %v400_v2 = vld [vmem:[%s1411_s14 + $0xa0] sm:$0xff]  ;;  %v401_v3 = vld [vmem:[%s1411_s14 + $0xa8] sm:$0xff]  ;;  %v421_v4 = vpack.c.bf16 %v399_v0, %v398_v63  ;;  %v354_v6 = vld [vmem:[%s1395_s8 + $0xb0] sm:$0xff] }
  0x22   : > { %1151 = vmatmul.mubr.msk.bf16.gmra.mrb[4].mxu1 %vm430_vm1, %v415_v32  ;;  %v422_v5 = vpack.c.bf16 %v401_v3, %v400_v2  ;;  %v355_v7 = vld [vmem:[%s1395_s8 + $0xb8] sm:$0xff]  ;;  %v356_v8 = vld [vmem:[%s1395_s8 + $0xc0] sm:$0xff]  ;;  %v357_v9 = vld [vmem:[%s1395_s8 + $0xc8] sm:$0xff] }
  0x23   : > { %1154 = vmatprep.mubr.msk.bf16.mxu1 %vm430_vm1, %v416_v33  ;;  %v375_v10 = vpack.c.bf16 %v355_v7, %v354_v6  ;;  %v402_v11 = vld [vmem:[%s1411_s14 + $0xb0] sm:$0xff]  ;;  %v403_v12 = vld [vmem:[%s1411_s14 + $0xb8] sm:$0xff]  ;;  %v376_v13 = vpack.c.bf16 %v357_v9, %v356_v8  ;;  %v404_v14 = vld [vmem:[%s1411_s14 + $0xc0] sm:$0xff] }
  0x24   : > { %v405_v15 = vld [vmem:[%s1411_s14 + $0xc8] sm:$0xff]  ;;  %v423_v16 = vpack.c.bf16 %v403_v12, %v402_v11  ;;  %v358_v18 = vld [vmem:[%s1395_s8 + $0xd0] sm:$0xff]  ;;  %v359_v19 = vld [vmem:[%s1395_s8 + $0xd8] sm:$0xff] }
  0x25   : > { %v424_v17 = vpack.c.bf16 %v405_v15, %v404_v14  ;;  %v360_v20 = vld [vmem:[%s1395_s8 + $0xe0] sm:$0xff]  ;;  %v361_v21 = vld [vmem:[%s1395_s8 + $0xe8] sm:$0xff]  ;;  %v377_v22 = vpack.c.bf16 %v359_v19, %v358_v18  ;;  %v406_v23 = vld [vmem:[%s1411_s14 + $0xd0] sm:$0xff] }
  0x26   : > { %v407_v24 = vld [vmem:[%s1411_s14 + $0xd8] sm:$0xff]  ;;  %v378_v25 = vpack.c.bf16 %v361_v21, %v360_v20  ;;  %v408_v26 = vld [vmem:[%s1411_s14 + $0xe0] sm:$0xff]  ;;  %v409_v27 = vld [vmem:[%s1411_s14 + $0xe8] sm:$0xff] }
  0x27   : > { %1189 = vmatmul.mubr.msk.bf16.gmra.mrb[8].mxu0 %vm430_vm1, %v369_v38  ;;  %v425_v28 = vpack.c.bf16 %v407_v24, %v406_v23  ;;  %v426_v29 = vpack.c.bf16 %v409_v27, %v408_v26  ;;  %v362_v30 = vld [vmem:[%s1395_s8 + $0xf0] sm:$0xff]  ;;  %v363_v31 = vld [vmem:[%s1395_s8 + $0xf8] sm:$0xff]  ;;  %v1506_v40 = vld [vmem:[%s1630_s4] ss:$0 sm:$0xff] }
  0x28   : > { %1192 = vmatprep.mubr.msk.bf16.mxu0 %vm430_vm1, %v370_v41  ;;  %v379_v32 = vpack.c.bf16 %v363_v31, %v362_v30  ;;  %v410_v33 = vld [vmem:[%s1411_s14 + $0xf0] sm:$0xff]  ;;  %v411_v34 = vld [vmem:[%s1411_s14 + $0xf8] sm:$0xff] }
  0x29   : > { %v427_v35 = vpack.c.bf16 %v411_v34, %v410_v33 }
  0x2a   : > { %1155 = vmatmul.mubr.msk.bf16.gmra.mrb[8].mxu1 %vm430_vm1, %v417_v44 }
  0x2b   : > { %1158 = vmatprep.mubr.msk.bf16.mxu1 %vm430_vm1, %v418_v45 }
  0x2f   : > { %1193 = vmatmul.mubr.msk.bf16.gmra.mrb[12].mxu0 %vm430_vm1, %v371_v50 }
  0x30   : > { %1196 = vmatprep.mubr.msk.bf16.mxu0 %vm430_vm1, %v372_v53 }
  0x32   : > { %1159 = vmatmul.mubr.msk.bf16.gmra.mrb[12].mxu1 %vm430_vm1, %v419_v56 }
  0x33   : > { %1162 = vmatprep.mubr.msk.bf16.mxu1 %vm430_vm1, %v420_v57 }
  0x37   : > { %1197 = vmatmul.mubr.msk.bf16.gmra.mrb[16].mxu0 %vm430_vm1, %v373_v62 }
  0x38   : > { %1200 = vmatprep.mubr.msk.bf16.mxu0 %vm430_vm1, %v374_v1 }
  0x3a   : > { %1163 = vmatmul.mubr.msk.bf16.gmra.mrb[16].mxu1 %vm430_vm1, %v421_v4 }
  0x3b   : > { %1166 = vmatprep.mubr.msk.bf16.mxu1 %vm430_vm1, %v422_v5 }
  0x3f   : > { %1201 = vmatmul.mubr.msk.bf16.gmra.mrb[20].mxu0 %vm430_vm1, %v375_v10 }
  0x40   : > { %1204 = vmatprep.mubr.msk.bf16.mxu0 %vm430_vm1, %v376_v13 }
  0x42   : > { %1167 = vmatmul.mubr.msk.bf16.gmra.mrb[20].mxu1 %vm430_vm1, %v423_v16 }
  0x43   : > { %1170 = vmatprep.mubr.msk.bf16.mxu1 %vm430_vm1, %v424_v17 }
  0x47   : > { %1205 = vmatmul.mubr.msk.bf16.gmra.mrb[24].mxu0 %vm430_vm1, %v377_v22 }
  0x48   : > { %1208 = vmatprep.mubr.msk.bf16.mxu0 %vm430_vm1, %v378_v25 }
  0x4a   : > { %1171 = vmatmul.mubr.msk.bf16.gmra.mrb[24].mxu1 %vm430_vm1, %v425_v28 }
  0x4b   : > { %1174 = vmatprep.mubr.msk.bf16.mxu1 %vm430_vm1, %v426_v29 }
  0x4f   : > { %1209 = vmatmul.mubr.msk.bf16.gmra.mrb[28].mxu0 %vm430_vm1, %v379_v32 }
  0x52   : > { %1175 = vmatmul.mubr.msk.bf16.gmra.mrb[28].mxu1 %vm430_vm1, %v427_v35 }
  0xea   : > { %v1182_v36 = vpop.f32.mrb[0].mxu0 }
  0xeb   : > { %v729_v37 = vpop.f32.mrb[1].mxu0 }
  0xec   : > { %v1183_v38 = vpop.f32.mrb[2].mxu0 }
  0xed   : > { %v1148_v39 = vpop.f32.mrb[0].mxu1  ;;  %v732_v41 = vpop.f32.mrb[3].mxu0 }
  0xee   : > { %v738_v42 = vadd.f32 %v1182_v36, %v1148_v39  ;;  %v517_v43 = vpop.f32.mrb[1].mxu1 }
  0xef   : > { %v730_v44 = vadd.f32 %v729_v37, %v517_v43  ;;  %v1149_v45 = vpop.f32.mrb[2].mxu1 }
  0xf0   : > { %v865_v46 = vadd.f32 %v1506_v40, %v738_v42  ;;  %v741_v47 = vadd.f32 %v1183_v38, %v1149_v45  ;;  %v520_v48 = vpop.f32.mrb[3].mxu1 }
  0xf1   : > { %v863_v49 = vadd.f32 %v1506_v40, %v730_v44  ;;  %v733_v50 = vadd.f32 %v732_v41, %v520_v48 }
  0xf2   : > { %898 = vst.msk [vmem:[%s1513_s19 + $0x10] sm:$0xff] %vm895_vm2, %v865_v46  ;;  %v866_v51 = vadd.f32 %v1506_v40, %v741_v47  ;;  %v1186_v52 = vpop.f32.mrb[4].mxu0 }
  0xf3   : > { %896 = vst.msk [vmem:[%s1513_s19] sm:$0xff] %vm895_vm2, %v863_v49  ;;  %v864_v53 = vadd.f32 %v1506_v40, %v733_v50  ;;  %v745_v54 = vpop.f32.mrb[5].mxu0 }
  0xf4   : > { %899 = vst.msk [vmem:[%s1513_s19 + $0x18] sm:$0xff] %vm895_vm2, %v866_v51  ;;  %v1187_v55 = vpop.f32.mrb[6].mxu0 }
  0xf5   : > { %897 = vst.msk [vmem:[%s1513_s19 + $0x8] sm:$0xff] %vm895_vm2, %v864_v53  ;;  %v1152_v56 = vpop.f32.mrb[4].mxu1  ;;  %v748_v57 = vpop.f32.mrb[7].mxu0 }
  0xf6   : > { %v754_v58 = vadd.f32 %v1186_v52, %v1152_v56  ;;  %v533_v59 = vpop.f32.mrb[5].mxu1 }
  0xf7   : > { %v746_v60 = vadd.f32 %v745_v54, %v533_v59  ;;  %v1153_v61 = vpop.f32.mrb[6].mxu1 }
  0xf8   : > { %v869_v62 = vadd.f32 %v1506_v40, %v754_v58  ;;  %v757_v63 = vadd.f32 %v1187_v55, %v1153_v61  ;;  %v536_v0 = vpop.f32.mrb[7].mxu1 }
  0xf9   : > { %v867_v1 = vadd.f32 %v1506_v40, %v746_v60  ;;  %v749_v2 = vadd.f32 %v748_v57, %v536_v0 }
  0xfa   : > { %902 = vst.msk [vmem:[%s1513_s19 + $0x30] sm:$0xff] %vm895_vm2, %v869_v62  ;;  %v870_v3 = vadd.f32 %v1506_v40, %v757_v63  ;;  %v1190_v4 = vpop.f32.mrb[8].mxu0 }
  0xfb   : > { %900 = vst.msk [vmem:[%s1513_s19 + $0x20] sm:$0xff] %vm895_vm2, %v867_v1  ;;  %v868_v5 = vadd.f32 %v1506_v40, %v749_v2  ;;  %v761_v6 = vpop.f32.mrb[9].mxu0 }
  0xfc   : > { %903 = vst.msk [vmem:[%s1513_s19 + $0x38] sm:$0xff] %vm895_vm2, %v870_v3  ;;  %v1191_v7 = vpop.f32.mrb[10].mxu0 }
  0xfd   : > { %901 = vst.msk [vmem:[%s1513_s19 + $0x28] sm:$0xff] %vm895_vm2, %v868_v5  ;;  %v1156_v8 = vpop.f32.mrb[8].mxu1  ;;  %v764_v9 = vpop.f32.mrb[11].mxu0 }
  0xfe   : > { %v770_v10 = vadd.f32 %v1190_v4, %v1156_v8  ;;  %v549_v11 = vpop.f32.mrb[9].mxu1 }
  0xff   : > { %v762_v12 = vadd.f32 %v761_v6, %v549_v11  ;;  %v1157_v13 = vpop.f32.mrb[10].mxu1 }
 0x100   : > { %v873_v14 = vadd.f32 %v1506_v40, %v770_v10  ;;  %v773_v15 = vadd.f32 %v1191_v7, %v1157_v13  ;;  %v552_v16 = vpop.f32.mrb[11].mxu1 }
 0x101   : > { %v871_v17 = vadd.f32 %v1506_v40, %v762_v12  ;;  %v765_v18 = vadd.f32 %v764_v9, %v552_v16 }
 0x102   : > { %906 = vst.msk [vmem:[%s1513_s19 + $0x50] sm:$0xff] %vm895_vm2, %v873_v14  ;;  %v874_v19 = vadd.f32 %v1506_v40, %v773_v15  ;;  %v1194_v20 = vpop.f32.mrb[12].mxu0 }
 0x103   : > { %904 = vst.msk [vmem:[%s1513_s19 + $0x40] sm:$0xff] %vm895_vm2, %v871_v17  ;;  %v872_v21 = vadd.f32 %v1506_v40, %v765_v18  ;;  %v777_v22 = vpop.f32.mrb[13].mxu0 }
 0x104   : > { %907 = vst.msk [vmem:[%s1513_s19 + $0x58] sm:$0xff] %vm895_vm2, %v874_v19  ;;  %v1195_v23 = vpop.f32.mrb[14].mxu0 }
 0x105   : > { %905 = vst.msk [vmem:[%s1513_s19 + $0x48] sm:$0xff] %vm895_vm2, %v872_v21  ;;  %v1160_v24 = vpop.f32.mrb[12].mxu1  ;;  %v780_v25 = vpop.f32.mrb[15].mxu0 }
 0x106   : > { %v786_v26 = vadd.f32 %v1194_v20, %v1160_v24  ;;  %v565_v27 = vpop.f32.mrb[13].mxu1 }
 0x107   : > { %v778_v28 = vadd.f32 %v777_v22, %v565_v27  ;;  %v1161_v29 = vpop.f32.mrb[14].mxu1 }
 0x108   : > { %v877_v30 = vadd.f32 %v1506_v40, %v786_v26  ;;  %v789_v31 = vadd.f32 %v1195_v23, %v1161_v29  ;;  %v568_v32 = vpop.f32.mrb[15].mxu1 }
 0x109   : > { %v875_v33 = vadd.f32 %v1506_v40, %v778_v28  ;;  %v781_v34 = vadd.f32 %v780_v25, %v568_v32 }
 0x10a   : > { %910 = vst.msk [vmem:[%s1513_s19 + $0x70] sm:$0xff] %vm895_vm2, %v877_v30  ;;  %v878_v35 = vadd.f32 %v1506_v40, %v789_v31  ;;  %v1198_v36 = vpop.f32.mrb[16].mxu0 }
 0x10b   : > { %908 = vst.msk [vmem:[%s1513_s19 + $0x60] sm:$0xff] %vm895_vm2, %v875_v33  ;;  %v876_v37 = vadd.f32 %v1506_v40, %v781_v34  ;;  %v793_v38 = vpop.f32.mrb[17].mxu0 }
 0x10c   : > { %911 = vst.msk [vmem:[%s1513_s19 + $0x78] sm:$0xff] %vm895_vm2, %v878_v35  ;;  %v1199_v39 = vpop.f32.mrb[18].mxu0 }
 0x10d   : > { %909 = vst.msk [vmem:[%s1513_s19 + $0x68] sm:$0xff] %vm895_vm2, %v876_v37  ;;  %v1164_v41 = vpop.f32.mrb[16].mxu1  ;;  %v796_v42 = vpop.f32.mrb[19].mxu0 }
 0x10e   : > { %v802_v43 = vadd.f32 %v1198_v36, %v1164_v41  ;;  %v581_v44 = vpop.f32.mrb[17].mxu1 }
 0x10f   : > { %v794_v45 = vadd.f32 %v793_v38, %v581_v44  ;;  %v1165_v46 = vpop.f32.mrb[18].mxu1 }
 0x110   : > { %v881_v47 = vadd.f32 %v1506_v40, %v802_v43  ;;  %v805_v48 = vadd.f32 %v1199_v39, %v1165_v46  ;;  %v584_v49 = vpop.f32.mrb[19].mxu1 }
 0x111   : > { %v879_v50 = vadd.f32 %v1506_v40, %v794_v45  ;;  %v797_v51 = vadd.f32 %v796_v42, %v584_v49 }
 0x112   : > { %914 = vst.msk [vmem:[%s1513_s19 + $0x90] sm:$0xff] %vm895_vm2, %v881_v47  ;;  %v882_v52 = vadd.f32 %v1506_v40, %v805_v48  ;;  %v1202_v53 = vpop.f32.mrb[20].mxu0 }
 0x113   : > { %912 = vst.msk [vmem:[%s1513_s19 + $0x80] sm:$0xff] %vm895_vm2, %v879_v50  ;;  %v880_v54 = vadd.f32 %v1506_v40, %v797_v51  ;;  %v809_v55 = vpop.f32.mrb[21].mxu0 }
 0x114   : > { %915 = vst.msk [vmem:[%s1513_s19 + $0x98] sm:$0xff] %vm895_vm2, %v882_v52  ;;  %v1203_v56 = vpop.f32.mrb[22].mxu0 }
 0x115   : > { %913 = vst.msk [vmem:[%s1513_s19 + $0x88] sm:$0xff] %vm895_vm2, %v880_v54  ;;  %v1168_v57 = vpop.f32.mrb[20].mxu1  ;;  %v812_v58 = vpop.f32.mrb[23].mxu0 }
 0x116   : > { %v818_v59 = vadd.f32 %v1202_v53, %v1168_v57  ;;  %v597_v60 = vpop.f32.mrb[21].mxu1 }
 0x117   : > { %v810_v61 = vadd.f32 %v809_v55, %v597_v60  ;;  %v1169_v62 = vpop.f32.mrb[22].mxu1 }
 0x118   : > { %v885_v63 = vadd.f32 %v1506_v40, %v818_v59  ;;  %v821_v0 = vadd.f32 %v1203_v56, %v1169_v62  ;;  %v600_v1 = vpop.f32.mrb[23].mxu1 }
 0x119   : > { %v883_v2 = vadd.f32 %v1506_v40, %v810_v61  ;;  %v813_v3 = vadd.f32 %v812_v58, %v600_v1 }
 0x11a   : > { %918 = vst.msk [vmem:[%s1513_s19 + $0xb0] sm:$0xff] %vm895_vm2, %v885_v63  ;;  %v886_v4 = vadd.f32 %v1506_v40, %v821_v0  ;;  %v1206_v5 = vpop.f32.mrb[24].mxu0 }
 0x11b   : > { %916 = vst.msk [vmem:[%s1513_s19 + $0xa0] sm:$0xff] %vm895_vm2, %v883_v2  ;;  %v884_v6 = vadd.f32 %v1506_v40, %v813_v3  ;;  %v825_v7 = vpop.f32.mrb[25].mxu0 }
 0x11c   : > { %919 = vst.msk [vmem:[%s1513_s19 + $0xb8] sm:$0xff] %vm895_vm2, %v886_v4  ;;  %v1207_v8 = vpop.f32.mrb[26].mxu0 }
 0x11d   : > { %917 = vst.msk [vmem:[%s1513_s19 + $0xa8] sm:$0xff] %vm895_vm2, %v884_v6  ;;  %v1172_v9 = vpop.f32.mrb[24].mxu1  ;;  %v828_v10 = vpop.f32.mrb[27].mxu0 }
 0x11e   : > { %v834_v11 = vadd.f32 %v1206_v5, %v1172_v9  ;;  %v613_v12 = vpop.f32.mrb[25].mxu1 }
 0x11f   : > { %v826_v13 = vadd.f32 %v825_v7, %v613_v12  ;;  %v1173_v14 = vpop.f32.mrb[26].mxu1 }
 0x120   : > { %v889_v15 = vadd.f32 %v1506_v40, %v834_v11  ;;  %v837_v16 = vadd.f32 %v1207_v8, %v1173_v14  ;;  %v616_v17 = vpop.f32.mrb[27].mxu1 }
 0x121   : > { %v887_v18 = vadd.f32 %v1506_v40, %v826_v13  ;;  %v829_v19 = vadd.f32 %v828_v10, %v616_v17 }
 0x122   : > { %922 = vst.msk [vmem:[%s1513_s19 + $0xd0] sm:$0xff] %vm895_vm2, %v889_v15  ;;  %v890_v20 = vadd.f32 %v1506_v40, %v837_v16  ;;  %v1210_v21 = vpop.f32.mrb[28].mxu0 }
 0x123   : > { %920 = vst.msk [vmem:[%s1513_s19 + $0xc0] sm:$0xff] %vm895_vm2, %v887_v18  ;;  %v888_v22 = vadd.f32 %v1506_v40, %v829_v19  ;;  %v841_v23 = vpop.f32.mrb[29].mxu0 }
 0x124   : > { %923 = vst.msk [vmem:[%s1513_s19 + $0xd8] sm:$0xff] %vm895_vm2, %v890_v20  ;;  %v1211_v24 = vpop.f32.mrb[30].mxu0 }
 0x125   : > { %921 = vst.msk [vmem:[%s1513_s19 + $0xc8] sm:$0xff] %vm895_vm2, %v888_v22  ;;  %v1176_v25 = vpop.f32.mrb[28].mxu1  ;;  %v844_v26 = vpop.f32.mrb[31].mxu0 }
 0x126   : > { %v850_v27 = vadd.f32 %v1210_v21, %v1176_v25  ;;  %v629_v28 = vpop.f32.mrb[29].mxu1 }
 0x127   : > { %v842_v29 = vadd.f32 %v841_v23, %v629_v28  ;;  %v1177_v30 = vpop.f32.mrb[30].mxu1 }
 0x128   : > { %v893_v31 = vadd.f32 %v1506_v40, %v850_v27  ;;  %v853_v32 = vadd.f32 %v1211_v24, %v1177_v30  ;;  %v632_v33 = vpop.f32.mrb[31].mxu1 }
 0x129   : > { %v891_v34 = vadd.f32 %v1506_v40, %v842_v29  ;;  %v845_v35 = vadd.f32 %v844_v26, %v632_v33 }
 0x12a   : > { %926 = vst.msk [vmem:[%s1513_s19 + $0xf0] sm:$0xff] %vm895_vm2, %v893_v31  ;;  %v894_v36 = vadd.f32 %v1506_v40, %v853_v32 }
 0x12b   : > { %924 = vst.msk [vmem:[%s1513_s19 + $0xe0] sm:$0xff] %vm895_vm2, %v891_v34  ;;  %v892_v37 = vadd.f32 %v1506_v40, %v845_v35 }
 0x12c   : > { %927 = vst.msk [vmem:[%s1513_s19 + $0xf8] sm:$0xff] %vm895_vm2, %v894_v36 }
 0x12d   : > { %925 = vst.msk [vmem:[%s1513_s19 + $0xe8] sm:$0xff] %vm895_vm2, %v892_v37 }
 0x12e PF: > { %s15_s22 = sadd.s32 1, %s1324_s22   ;;  %s1632_s18 = smov %s1316_s20 }
 0x12f   : > { %p12_p7 = scmp.ge.s32.totalorder %s15_s22, 6   ;;  %s1633_s19 = smov %s1320_s21 }
 0x130   : > { %s1634_s20 = smov %s1637_s23  ;;  %s1635_s21 = smov %s1641_s24 }
 0x131   :  { %14 = sbr.rel (!%p12_p7) target bundleno = 3 (0x3), region = 73 }

</bundles_post_ra>
